<compile_context>
chip_gen: v7x
topology: tpu7x:2x2x1
jax: 0.10.0
libtpu: 0.0.40
codegen_flags: <defaults>
</compile_context>

<pallas_src>
import jax
import jax.numpy as jnp
from jax.experimental import pallas as pl
from jax.experimental.pallas import tpu as pltpu


def _round_up(x, m):
    return ((x + m - 1) // m) * m


def add_proj_enc_kernel(x_ref, w1_ref, b1_ref, w2_ref, b2_ref, o_ref):
    # encoder: Linear. Cast x to the MXU compute dtype in-kernel (avoids a
    # separate wrapper-side HBM cast pass); accumulate in f32.
    x = x_ref[...].astype(w1_ref.dtype)
    h = jnp.dot(x, w1_ref[...], preferred_element_type=jnp.float32)
    h = jnp.maximum(h + b1_ref[...], 0.0)          # bias + ReLU in f32
    # proj_enc: Linear, f32 accumulation, bias in f32.
    y = jnp.dot(h.astype(w2_ref.dtype), w2_ref[...],
                preferred_element_type=jnp.float32)
    o_ref[...] = (y + b2_ref[...]).astype(o_ref.dtype)


def prepare_params(w1, b1, w2, b2, compute_dtype=jnp.bfloat16):
    """Hoist the per-call weight cast / bias reshape out of the forward path."""
    return (w1.astype(compute_dtype),
            jnp.asarray(b1, jnp.float32).reshape(1, -1),
            w2.astype(compute_dtype),
            jnp.asarray(b2, jnp.float32).reshape(1, -1))


def add_proj_enc(x, w1, b1, w2, b2, *, tile_b=None,
                 compute_dtype=jnp.bfloat16, out_dtype=None):
    """Fused encoder(Linear+ReLU) -> proj_enc(Linear) forward pass.

    x: [B, D_in], w1: [D_in, D_hid], b1: [D_hid] (or [1, D_hid]),
    w2: [D_hid, D_proj], b2: [D_proj] (or [1, D_proj]).
    Weights are stored pre-transposed (input-major). If weights were prepared
    with prepare_params() the casts below are no-ops.
    """
    out_dtype = x.dtype if out_dtype is None else out_dtype
    B, D_in = x.shape
    D_hid = w1.shape[1]
    D_proj = w2.shape[1]

    # Parameter cast / reshape (no-ops when pre-prepared via prepare_params).
    w1c = w1.astype(compute_dtype)
    w2c = w2.astype(compute_dtype)
    b1c = jnp.asarray(b1, jnp.float32).reshape(1, -1)
    b2c = jnp.asarray(b2, jnp.float32).reshape(1, -1)

    xsize = jnp.dtype(x.dtype).itemsize
    csize = jnp.dtype(compute_dtype).itemsize
    osize = jnp.dtype(out_dtype).itemsize

    def _vmem_need(tb):
        return (
            2 * tb * D_in * xsize                         # x tile (double-buffered)
            + 2 * tb * D_proj * osize                     # out tile (double-buffered)
            + (D_in * D_hid + D_hid * D_proj) * csize     # resident weights (1 buf)
            + (D_hid + D_proj) * 4                        # resident biases
            + tb * D_in * csize                           # in-kernel x cast
            + tb * D_hid * 4                              # h (f32)
            + tb * D_hid * csize                          # h cast for 2nd matmul
            + tb * D_proj * 4                             # y (f32)
        )

    # Generation-aware VMEM budget (128 MiB on v5e/v6e, 64 MiB per-core on v7x).
    try:
        vmem_cap = int(pltpu.get_tpu_info().vmem_capacity_bytes)
    except Exception:
        vmem_cap = 64 * 1024 * 1024  # conservative default (works everywhere)
    vmem_budget = int(vmem_cap * 0.85)

    if tile_b is None:
        if B < 128:
            tile_b = _round_up(B, 16)           # single small tile; no waste rows
        else:
            # Multiple of 128 (dense MXU rows). Cap so the batch grid has >= 2
            # steps when possible -> both TensorCores on v7x get work.
            cap = _round_up(-(-B // 2), 128) if B > 128 else 128
            tile_b = min(1024, _round_up(B, 128), cap)
            tile_b = max(128, (tile_b // 128) * 128)
            while tile_b > 128 and 2 * _vmem_need(tile_b) > vmem_budget:
                tile_b -= 128
    else:
        tile_b = _round_up(min(tile_b, _round_up(B, 8)), 8)

    # TODO(synk): add a K-tiled (grid over D_in, "arbitrary") plan with an f32
    # accumulator for configs whose resident weights exceed the VMEM budget
    # even at tile_b=128 (relevant on v7x's 64 MiB for very large D_in*D_hid).
    vmem_limit = int(min(vmem_budget,
                         max(32 * 1024 * 1024, 2 * _vmem_need(tile_b))))

    grid = (pl.cdiv(B, tile_b),)

    flops = 2 * B * (D_in * D_hid + D_hid * D_proj)
    bytes_accessed = (
        B * D_in * xsize
        + (D_in * D_hid + D_hid * D_proj) * csize
        + (D_hid + D_proj) * 4
        + B * D_proj * osize
    )

    def _run(single_buffer_weights):
        # Constant-index weight/bias blocks: single-buffer them to halve their
        # VMEM footprint (they stay resident across the whole batch grid).
        wkw = dict(pipeline_mode=pl.Buffered(1)) if single_buffer_weights else {}
        in_specs = [
            pl.BlockSpec((tile_b, D_in), lambda i: (i, 0)),            # x tile
            pl.BlockSpec((D_in, D_hid), lambda i: (0, 0), **wkw),      # w1 resident
            pl.BlockSpec((1, D_hid), lambda i: (0, 0), **wkw),         # b1 resident
            pl.BlockSpec((D_hid, D_proj), lambda i: (0, 0), **wkw),    # w2 resident
            pl.BlockSpec((1, D_proj), lambda i: (0, 0), **wkw),        # b2 resident
        ]
        return pl.pallas_call(
            add_proj_enc_kernel,
            out_shape=jax.ShapeDtypeStruct((B, D_proj), out_dtype),
            grid=grid,
            in_specs=in_specs,
            out_specs=pl.BlockSpec((tile_b, D_proj), lambda i: (i, 0)),
            compiler_params=pltpu.CompilerParams(
                dimension_semantics=("parallel",),
                vmem_limit_bytes=vmem_limit,
            ),
            cost_estimate=pl.CostEstimate(
                flops=flops, transcendentals=0, bytes_accessed=bytes_accessed),
        )(x, w1c, b1c, w2c, b2c)

    try:
        return _run(True)
    except Exception:
        # Fallback if pl.Buffered(1) residency is unsupported on this jax
        # version: default (double-buffered) specs, still correct.
        return _run(False)


def _torch_linear_init(key, fan_in, fan_out, dtype=jnp.float32):
    """Mimic torch.nn.Linear default init: U(-1/sqrt(fan_in), 1/sqrt(fan_in))."""
    kw, kb = jax.random.split(key)
    bound = 1.0 / (fan_in ** 0.5)
    # weight stored pre-transposed: [fan_in, fan_out]
    w = jax.random.uniform(kw, (fan_in, fan_out), dtype, minval=-bound, maxval=bound)
    b = jax.random.uniform(kb, (fan_out,), dtype, minval=-bound, maxval=bound)
    return w, b


if __name__ == "__main__":
    key = jax.random.PRNGKey(0)
    k_x, k_enc, k_proj = jax.random.split(key, 3)

    # small shapes: batch=8, input features=32, encoder hidden=64, proj dim=16
    B, D_in, D_hid, D_proj = 8, 32, 64, 16

    x = jax.random.normal(k_x, (B, D_in), jnp.float32)
    w1, b1 = _torch_linear_init(k_enc, D_in, D_hid)
    w2, b2 = _torch_linear_init(k_proj, D_hid, D_proj)

    # pure-JAX f32 reference
    ref = jnp.maximum(x @ w1 + b1, 0.0) @ w2 + b2

    # default bf16-MXU path; weight cast hoisted once via prepare_params
    params = prepare_params(w1, b1, w2, b2, compute_dtype=jnp.bfloat16)
    out = add_proj_enc(x, *params, compute_dtype=jnp.bfloat16)
    out = jax.block_until_ready(out)
    assert out.shape == (B, D_proj)
    assert jnp.allclose(out, ref, atol=3e-2, rtol=3e-2), float(
        jnp.max(jnp.abs(out - ref)))

    # f32 compute path (for callers needing higher precision)
    out32 = add_proj_enc(x, w1, b1, w2, b2, compute_dtype=jnp.float32)
    out32 = jax.block_until_ready(out32)
    assert out32.shape == (B, D_proj)
    assert jnp.allclose(out32, ref, atol=2e-3, rtol=2e-3), float(
        jnp.max(jnp.abs(out32 - ref)))

    print("KERNEL_OK")
</pallas_src>

<mosaic_0001>
module attributes {stable_mosaic.version = 11 : i64} {
  func.func @add_proj_enc_kernel(%arg0: i32, %arg1: memref<16x32xf32, #tpu.memory_space<vmem>>, %arg2: memref<32x64xbf16, #tpu.memory_space<vmem>>, %arg3: memref<1x64xf32, #tpu.memory_space<vmem>>, %arg4: memref<64x16xbf16, #tpu.memory_space<vmem>>, %arg5: memref<1x16xf32, #tpu.memory_space<vmem>>, %arg6: memref<16x16xf32, #tpu.memory_space<vmem>>) attributes {dimension_semantics = [#tpu.dimension_semantics<parallel>], iteration_bounds = array<i64: 1>, scalar_prefetch = 0 : i64, scratch_operands = 0 : i64, tpu.core_type = #tpu.core_type<tc>, window_params = [{transform_indices = @transform_0, window_bounds = array<i64: 16, 32>}, {pipeline_mode = #tpu.pipeline_mode<synchronous>, transform_indices = @transform_1, window_bounds = array<i64: 32, 64>}, {pipeline_mode = #tpu.pipeline_mode<synchronous>, transform_indices = @transform_2, window_bounds = array<i64: 1, 64>}, {pipeline_mode = #tpu.pipeline_mode<synchronous>, transform_indices = @transform_3, window_bounds = array<i64: 64, 16>}, {pipeline_mode = #tpu.pipeline_mode<synchronous>, transform_indices = @transform_4, window_bounds = array<i64: 1, 16>}, {transform_indices = @transform_5, window_bounds = array<i64: 16, 16>}]} {
    %c0 = arith.constant 0 : index
    %c0_0 = arith.constant 0 : index
    %0 = vector.load %arg1[%c0, %c0_0] : memref<16x32xf32, #tpu.memory_space<vmem>>, vector<16x32xf32>
    %1 = arith.truncf %0 : vector<16x32xf32> to vector<16x32xbf16>
    %c0_1 = arith.constant 0 : index
    %c0_2 = arith.constant 0 : index
    %2 = vector.load %arg2[%c0_1, %c0_2] : memref<32x64xbf16, #tpu.memory_space<vmem>>, vector<32x64xbf16>
    %cst = arith.constant dense<0.000000e+00> : vector<16x64xf32>
    %3 = tpu.matmul %1, %2, %cst {dimension_numbers = #tpu.dot_dimension_numbers<[1], [0], [0], [1], [0, 0, 1, 1], [], []>} : vector<16x32xbf16>, vector<32x64xbf16>, vector<16x64xf32> -> vector<16x64xf32>
    %c0_3 = arith.constant 0 : index
    %c0_4 = arith.constant 0 : index
    %4 = vector.load %arg3[%c0_3, %c0_4] : memref<1x64xf32, #tpu.memory_space<vmem>>, vector<1x64xf32>
    %5 = vector.broadcast %4 : vector<1x64xf32> to vector<16x64xf32>
    %6 = arith.addf %3, %5 : vector<16x64xf32>
    %cst_5 = arith.constant 0.000000e+00 : f32
    %7 = vector.broadcast %cst_5 : f32 to vector<16x64xf32>
    %8 = arith.maximumf %6, %7 : vector<16x64xf32>
    %9 = arith.truncf %8 : vector<16x64xf32> to vector<16x64xbf16>
    %c0_6 = arith.constant 0 : index
    %c0_7 = arith.constant 0 : index
    %10 = vector.load %arg4[%c0_6, %c0_7] : memref<64x16xbf16, #tpu.memory_space<vmem>>, vector<64x16xbf16>
    %cst_8 = arith.constant dense<0.000000e+00> : vector<16x16xf32>
    %11 = tpu.matmul %9, %10, %cst_8 {dimension_numbers = #tpu.dot_dimension_numbers<[1], [0], [0], [1], [0, 0, 1, 1], [], []>} : vector<16x64xbf16>, vector<64x16xbf16>, vector<16x16xf32> -> vector<16x16xf32>
    %c0_9 = arith.constant 0 : index
    %c0_10 = arith.constant 0 : index
    %12 = vector.load %arg5[%c0_9, %c0_10] : memref<1x16xf32, #tpu.memory_space<vmem>>, vector<1x16xf32>
    %13 = vector.broadcast %12 : vector<1x16xf32> to vector<16x16xf32>
    %14 = arith.addf %11, %13 : vector<16x16xf32>
    %c0_11 = arith.constant 0 : index
    %c0_12 = arith.constant 0 : index
    %15 = vector.load %arg6[%c0_11, %c0_12] : memref<16x16xf32, #tpu.memory_space<vmem>>, vector<16x16xf32>
    tpu.vector_store %arg6[%c0_11, %c0_12], %14 {strides = array<i32>} : memref<16x16xf32, #tpu.memory_space<vmem>>, vector<16x16xf32>,
    return
  }
  func.func @transform_0(%arg0: i32) -> (i32, i32) {
    %c0_i32 = arith.constant 0 : i32
    %c0_i32_0 = arith.constant 0 : i32
    return %arg0, %c0_i32 : i32, i32
  }
  func.func @transform_1(%arg0: i32) -> (i32, i32) {
    %c0_i32 = arith.constant 0 : i32
    %c0_i32_0 = arith.constant 0 : i32
    %c0_i32_1 = arith.constant 0 : i32
    return %c0_i32, %c0_i32_0 : i32, i32
  }
  func.func @transform_2(%arg0: i32) -> (i32, i32) {
    %c0_i32 = arith.constant 0 : i32
    %c0_i32_0 = arith.constant 0 : i32
    %c0_i32_1 = arith.constant 0 : i32
    return %c0_i32, %c0_i32_0 : i32, i32
  }
  func.func @transform_3(%arg0: i32) -> (i32, i32) {
    %c0_i32 = arith.constant 0 : i32
    %c0_i32_0 = arith.constant 0 : i32
    %c0_i32_1 = arith.constant 0 : i32
    return %c0_i32, %c0_i32_0 : i32, i32
  }
  func.func @transform_4(%arg0: i32) -> (i32, i32) {
    %c0_i32 = arith.constant 0 : i32
    %c0_i32_0 = arith.constant 0 : i32
    %c0_i32_1 = arith.constant 0 : i32
    return %c0_i32, %c0_i32_0 : i32, i32
  }
  func.func @transform_5(%arg0: i32) -> (i32, i32) {
    %c0_i32 = arith.constant 0 : i32
    %c0_i32_0 = arith.constant 0 : i32
    return %arg0, %c0_i32 : i32, i32
  }
}

module attributes {stable_mosaic.version = 11 : i64} {
  func.func @add_proj_enc_kernel(%arg0: i32, %arg1: memref<16x32xf32, #tpu.memory_space<vmem>>, %arg2: memref<32x64xbf16, #tpu.memory_space<vmem>>, %arg3: memref<1x64xf32, #tpu.memory_space<vmem>>, %arg4: memref<64x16xbf16, #tpu.memory_space<vmem>>, %arg5: memref<1x16xf32, #tpu.memory_space<vmem>>, %arg6: memref<16x16xf32, #tpu.memory_space<vmem>>) attributes {dimension_semantics = [#tpu.dimension_semantics<parallel>], iteration_bounds = array<i64: 1>, scalar_prefetch = 0 : i64, scratch_operands = 0 : i64, tpu.core_type = #tpu.core_type<tc>, window_params = [{transform_indices = @transform_0, window_bounds = array<i64: 16, 32>}, {pipeline_mode = #tpu.pipeline_mode<synchronous>, transform_indices = @transform_1, window_bounds = array<i64: 32, 64>}, {pipeline_mode = #tpu.pipeline_mode<synchronous>, transform_indices = @transform_2, window_bounds = array<i64: 1, 64>}, {pipeline_mode = #tpu.pipeline_mode<synchronous>, transform_indices = @transform_3, window_bounds = array<i64: 64, 16>}, {pipeline_mode = #tpu.pipeline_mode<synchronous>, transform_indices = @transform_4, window_bounds = array<i64: 1, 16>}, {transform_indices = @transform_5, window_bounds = array<i64: 16, 16>}]} {
    %c0 = arith.constant 0 : index
    %c0_0 = arith.constant 0 : index
    %0 = vector.load %arg1[%c0, %c0_0] : memref<16x32xf32, #tpu.memory_space<vmem>>, vector<16x32xf32>
    %1 = arith.truncf %0 : vector<16x32xf32> to vector<16x32xbf16>
    %c0_1 = arith.constant 0 : index
    %c0_2 = arith.constant 0 : index
    %2 = vector.load %arg2[%c0_1, %c0_2] : memref<32x64xbf16, #tpu.memory_space<vmem>>, vector<32x64xbf16>
    %cst = arith.constant dense<0.000000e+00> : vector<16x64xf32>
    %3 = tpu.matmul %1, %2, %cst {dimension_numbers = #tpu.dot_dimension_numbers<[1], [0], [0], [1], [0, 0, 1, 1], [], []>} : vector<16x32xbf16>, vector<32x64xbf16>, vector<16x64xf32> -> vector<16x64xf32>
    %c0_3 = arith.constant 0 : index
    %c0_4 = arith.constant 0 : index
    %4 = vector.load %arg3[%c0_3, %c0_4] : memref<1x64xf32, #tpu.memory_space<vmem>>, vector<1x64xf32>
    %5 = vector.broadcast %4 : vector<1x64xf32> to vector<16x64xf32>
    %6 = arith.addf %3, %5 : vector<16x64xf32>
    %cst_5 = arith.constant 0.000000e+00 : f32
    %7 = vector.broadcast %cst_5 : f32 to vector<16x64xf32>
    %8 = arith.maximumf %6, %7 : vector<16x64xf32>
    %9 = arith.truncf %8 : vector<16x64xf32> to vector<16x64xbf16>
    %c0_6 = arith.constant 0 : index
    %c0_7 = arith.constant 0 : index
    %10 = vector.load %arg4[%c0_6, %c0_7] : memref<64x16xbf16, #tpu.memory_space<vmem>>, vector<64x16xbf16>
    %cst_8 = arith.constant dense<0.000000e+00> : vector<16x16xf32>
    %11 = tpu.matmul %9, %10, %cst_8 {dimension_numbers = #tpu.dot_dimension_numbers<[1], [0], [0], [1], [0, 0, 1, 1], [], []>} : vector<16x64xbf16>, vector<64x16xbf16>, vector<16x16xf32> -> vector<16x16xf32>
    %c0_9 = arith.constant 0 : index
    %c0_10 = arith.constant 0 : index
    %12 = vector.load %arg5[%c0_9, %c0_10] : memref<1x16xf32, #tpu.memory_space<vmem>>, vector<1x16xf32>
    %13 = vector.broadcast %12 : vector<1x16xf32> to vector<16x16xf32>
    %14 = arith.addf %11, %13 : vector<16x16xf32>
    %c0_11 = arith.constant 0 : index
    %c0_12 = arith.constant 0 : index
    %15 = vector.load %arg6[%c0_11, %c0_12] : memref<16x16xf32, #tpu.memory_space<vmem>>, vector<16x16xf32>
    tpu.vector_store %arg6[%c0_11, %c0_12], %14 {strides = array<i32>} : memref<16x16xf32, #tpu.memory_space<vmem>>, vector<16x16xf32>,
    return
  }
  func.func @transform_0(%arg0: i32) -> (i32, i32) {
    %c0_i32 = arith.constant 0 : i32
    %c0_i32_0 = arith.constant 0 : i32
    return %arg0, %c0_i32 : i32, i32
  }
  func.func @transform_1(%arg0: i32) -> (i32, i32) {
    %c0_i32 = arith.constant 0 : i32
    %c0_i32_0 = arith.constant 0 : i32
    %c0_i32_1 = arith.constant 0 : i32
    return %c0_i32, %c0_i32_0 : i32, i32
  }
  func.func @transform_2(%arg0: i32) -> (i32, i32) {
    %c0_i32 = arith.constant 0 : i32
    %c0_i32_0 = arith.constant 0 : i32
    %c0_i32_1 = arith.constant 0 : i32
    return %c0_i32, %c0_i32_0 : i32, i32
  }
  func.func @transform_3(%arg0: i32) -> (i32, i32) {
    %c0_i32 = arith.constant 0 : i32
    %c0_i32_0 = arith.constant 0 : i32
    %c0_i32_1 = arith.constant 0 : i32
    return %c0_i32, %c0_i32_0 : i32, i32
  }
  func.func @transform_4(%arg0: i32) -> (i32, i32) {
    %c0_i32 = arith.constant 0 : i32
    %c0_i32_0 = arith.constant 0 : i32
    %c0_i32_1 = arith.constant 0 : i32
    return %c0_i32, %c0_i32_0 : i32, i32
  }
  func.func @transform_5(%arg0: i32) -> (i32, i32) {
    %c0_i32 = arith.constant 0 : i32
    %c0_i32_0 = arith.constant 0 : i32
    return %arg0, %c0_i32 : i32, i32
  }
}

</mosaic_0001>

<bundles_post_ra>
// kernel: tpu_custom_call.1
= control target key start
LH: loop header
LB: loop body
LE: loop exit
PB: predicated region body
PF: predicated region fallthrough
CT: control target
= control target key end

     0   :  { %10 = vsyncpa [#allocation3], 0  ;;  %v272_v1 = vmov 0.0   ;;  %vm273_vm0 = vmmov 0   ;;  %vm48_vm1 = vcmask 261120   ;;  %vm135_vm2 = vcmask 523264   ;;  %s349_s0 = inlined_call_operand.vmem [shape: f32[8,32], index: 0, kind: input, shape index: {}]   ;;  %s350_s1 = inlined_call_operand.vmem [shape: bf16[32,64], index: 1, kind: input, shape index: {}]   ;;  %s351_s2 = inlined_call_operand.vmem [shape: f32[1,64], index: 2, kind: input, shape index: {}]   ;;  %s352_s3 = inlined_call_operand.vmem [shape: bf16[64,16], index: 3, kind: input, shape index: {}]   ;;  %s353_s4 = inlined_call_operand.vmem [shape: f32[1,16], index: 4, kind: input, shape index: {}]   ;;  %s354_s5 = inlined_call_operand.hbm [shape: f32[8,16], index: 5, kind: output, shape index: {}]  }
   0x1   :  { %v242_v0 = vld [vmem:[%s350_s1] sm:$0xff]   ;;  %217 = vmatprep.subr.bf16.mxu0 %v272_v1  ;;  %225 = vmatprep.subr.bf16.mxu1 %v272_v1  ;;  %v243_v2 = vld [vmem:[%s350_s1 + $0x8] sm:$0xff]   ;;  %v246_v8 = vld [vmem:[%s352_s3 + $0x10] sm:$0xff]   ;;  %vm180_vm3 = vcmask 130048  }
   0x2   :  { %218 = vmatpush3.bf16.msra.mxu0 %v242_v0  ;;  %v22_v3 = vld [vmem:[%s349_s0] sm:$0xff]  ;;  %v23_v4 = vld [vmem:[%s349_s0 + $0x8] sm:$0xff]  ;;  %221 = vmatprep.mubr.msk.bf16.mxu0 %vm273_vm0, %v272_v1  ;;  %v247_v9 = vld [vmem:[%s352_s3 + $0x18] sm:$0xff]  }
   0x3   :  { %219 = vmatprep.subr.bf16.mxu0 %v272_v1  ;;  %v244_v5 = vld [vmem:[%s352_s3] sm:$0xff]   ;;  %233 = vmatprep.mubr.msk.bf16.mxu1 %vm273_vm0, %v272_v1  ;;  %v24_v6 = vpack.c.bf16 %v23_v4, %v22_v3  ;;  %v245_v7 = vld [vmem:[%s352_s3 + $0x8] sm:$0xff]  }
   0x4   :  { %226 = vmatpush3.bf16.msra.mxu1 %v244_v5  ;;  %v199_v10 = vld [vmem:[%s351_s2] ss:$0 sm:$0xff] }
   0x5   :  { %227 = vmatprep.subr.bf16.mxu1 %v272_v1  ;;  %v203_v20 = vld [vmem:[%s353_s4] ss:$0 sm:$0xff] }
   0x6   :  { %220 = vmatpush3.bf16.msra.mxu0 %v243_v2 }
   0x8   :  { %228 = vmatpush3.bf16.msra.mxu1 %v245_v7 }
   0x9   :  { %222 = vmatmul.mubr.msk.bf16.vlgmr.msra.gmra.mrb[0].mxu0 %vm48_vm1, %v24_v6  ;;  %229 = vmatprep.subr.bf16.mxu1 %v272_v1 }
   0xc   :  { %230 = vmatpush3.bf16.msra.mxu1 %v246_v8 }
   0xd   :  { %231 = vmatprep.subr.bf16.mxu1 %v272_v1 }
  0x10   :  { %232 = vmatpush3.bf16.msra.mxu1 %v247_v9 }
  0xdc   :  { %v86_v11 = vpop.f32.mrb[0].mxu0 }
  0xdd   :  { %v87_v12 = vadd.f32 %v199_v10, %v86_v11  ;;  %v223_v13 = vpop.f32.mrb[1].mxu0 }
  0xde   :  { %v89_v14 = vpop.f32.mrb[2].mxu0 }
  0xdf   :  { %v90_v15 = vadd.f32 %v199_v10, %v89_v14  ;;  %v224_v16 = vpop.f32.mrb[3].mxu0  ;;  %v93_v17 = vmax.f32 %v87_v12, 0.0 }
  0xe1   :  { %v94_v18 = vmax.f32 %v90_v15, 0.0 }
  0xe3   :  { %v95_v19 = vpack.c.bf16 %v94_v18, %v93_v17 }
  0xe5   :  { %234 = vmatmul.mubr.msk.bf16.vlgmr.msra.gmra.mrb[0].mxu1 %vm135_vm2, %v95_v19 }
 0x1b8   :  { %v173_v21 = vpop.f32.mrb[0].mxu1 }
 0x1b9   :  { %v174_v22 = vadd.f32 %v203_v20, %v173_v21  ;;  %v235_v23 = vpop.f32.mrb[1].mxu1 }
 0x1ba   :  { %v176_v24 = vpop.f32.mrb[2].mxu1 }
 0x1bb   :  { %181 = vst.msk [vmem:[#allocation2] sm:$0xff] %vm180_vm3, %v174_v22  ;;  %v177_v25 = vadd.f32 %v203_v20, %v176_v24  ;;  %v236_v26 = vpop.f32.mrb[3].mxu1 }
 0x1bd   :  { %182 = vst.msk [vmem:[#allocation2 + $0x8] sm:$0xff] %vm180_vm3, %v177_v25 }
 0x1be   :  { %187 = vsyncadd [#allocation3], 128  ;;  %s274_s2 = smov [#allocation2]  }
 0x1bf   :  { %s188_s3 = sshll.u32 %s274_s2, 4  ;;  %s189_s3 = int_to_ptr.vmem [resolvable:$true] %s188_s3 }
 0x1c0   :  { %s248_s11 = scalar_lea.vmem %s189_s3, 128  ;;  %s252_s12 = scalar_lea.vmem %s189_s3, 256 }
 0x1c1   :  { %p249_p0 = scmp.ne.s32.totalorder %s189_s3, %s248_s11  ;;  %p253_p1 = scmp.lt.s32.totalorder %s189_s3, %s189_s3 }
 0x1c2   :  { %p254_p2 = scmp.lt.s32.totalorder %s252_s12, %s248_s11 }
 0x1c4   :  { %p255_p3 = por %p254_p2, %p253_p1 }
 0x1c6   :  { %p256_p4 = pnand %p255_p3, %p249_p0 }
 0x1c8   :  { %259 = shalt.err (!%p256_p4)
}
 0x1c9   :  { %s260_s14 = scalar_lea.hbm %s354_s5, 128 }
 0x1ca   :  { %p261_p5 = scmp.ne.s32.totalorder %s354_s5, %s260_s14  ;;  %p264_p6 = scmp.lt.u32.totalorder %s260_s14, %s354_s5 }
 0x1cc   :  { %p266_p7 = pnand %p264_p6, %p261_p5 }
 0x1ce   :  { %269 = shalt.err (!%p266_p7)
}
 0x1cf   :  { %s275_s19 = smov 128   ;;  %s276_s20 = smov 8  }
 0x1d0   :  { %194 = dma.vmem_to_hbm [thread:$0]  %s189_s3, 128, %s354_s5, [#allocation3], %s275_s19, %s275_s19, %s276_s20  }
 0x1d1   :  { %270 = dma.done.wait [#allocation3], 256  }
 0x1d2   :  { %271 = vsyncadd [#allocation3], 4294967040 }
 0x1d3   :  { %198 = vsyncpa [#allocation3], 1 }

// kernel: tpu_custom_call.1
= control target key start
LH: loop header
LB: loop body
LE: loop exit
PB: predicated region body
PF: predicated region fallthrough
CT: control target
= control target key end

     0   :  { %10 = vsyncpa [#allocation3], 0  ;;  %v272_v1 = vmov 0.0   ;;  %vm273_vm0 = vmmov 0   ;;  %vm48_vm1 = vcmask 261120   ;;  %vm135_vm2 = vcmask 523264   ;;  %s349_s0 = inlined_call_operand.vmem [shape: f32[8,32], index: 0, kind: input, shape index: {}]   ;;  %s350_s1 = inlined_call_operand.vmem [shape: bf16[32,64], index: 1, kind: input, shape index: {}]   ;;  %s351_s2 = inlined_call_operand.vmem [shape: f32[1,64], index: 2, kind: input, shape index: {}]   ;;  %s352_s3 = inlined_call_operand.vmem [shape: bf16[64,16], index: 3, kind: input, shape index: {}]   ;;  %s353_s4 = inlined_call_operand.vmem [shape: f32[1,16], index: 4, kind: input, shape index: {}]   ;;  %s354_s5 = inlined_call_operand.hbm [shape: f32[8,16], index: 5, kind: output, shape index: {}]  }
   0x1   :  { %v242_v0 = vld [vmem:[%s350_s1] sm:$0xff]   ;;  %217 = vmatprep.subr.bf16.mxu0 %v272_v1  ;;  %225 = vmatprep.subr.bf16.mxu1 %v272_v1  ;;  %v243_v2 = vld [vmem:[%s350_s1 + $0x8] sm:$0xff]   ;;  %v246_v8 = vld [vmem:[%s352_s3 + $0x10] sm:$0xff]   ;;  %vm180_vm3 = vcmask 130048  }
   0x2   :  { %218 = vmatpush3.bf16.msra.mxu0 %v242_v0  ;;  %v22_v3 = vld [vmem:[%s349_s0] sm:$0xff]  ;;  %v23_v4 = vld [vmem:[%s349_s0 + $0x8] sm:$0xff]  ;;  %221 = vmatprep.mubr.msk.bf16.mxu0 %vm273_vm0, %v272_v1  ;;  %v247_v9 = vld [vmem:[%s352_s3 + $0x18] sm:$0xff]  }
   0x3   :  { %219 = vmatprep.subr.bf16.mxu0 %v272_v1  ;;  %v244_v5 = vld [vmem:[%s352_s3] sm:$0xff]   ;;  %233 = vmatprep.mubr.msk.bf16.mxu1 %vm273_vm0, %v272_v1  ;;  %v24_v6 = vpack.c.bf16 %v23_v4, %v22_v3  ;;  %v245_v7 = vld [vmem:[%s352_s3 + $0x8] sm:$0xff]  }
   0x4   :  { %226 = vmatpush3.bf16.msra.mxu1 %v244_v5  ;;  %v199_v10 = vld [vmem:[%s351_s2] ss:$0 sm:$0xff] }
   0x5   :  { %227 = vmatprep.subr.bf16.mxu1 %v272_v1  ;;  %v203_v20 = vld [vmem:[%s353_s4] ss:$0 sm:$0xff] }
   0x6   :  { %220 = vmatpush3.bf16.msra.mxu0 %v243_v2 }
   0x8   :  { %228 = vmatpush3.bf16.msra.mxu1 %v245_v7 }
   0x9   :  { %222 = vmatmul.mubr.msk.bf16.vlgmr.msra.gmra.mrb[0].mxu0 %vm48_vm1, %v24_v6  ;;  %229 = vmatprep.subr.bf16.mxu1 %v272_v1 }
   0xc   :  { %230 = vmatpush3.bf16.msra.mxu1 %v246_v8 }
   0xd   :  { %231 = vmatprep.subr.bf16.mxu1 %v272_v1 }
  0x10   :  { %232 = vmatpush3.bf16.msra.mxu1 %v247_v9 }
  0xdc   :  { %v86_v11 = vpop.f32.mrb[0].mxu0 }
  0xdd   :  { %v87_v12 = vadd.f32 %v199_v10, %v86_v11  ;;  %v223_v13 = vpop.f32.mrb[1].mxu0 }
  0xde   :  { %v89_v14 = vpop.f32.mrb[2].mxu0 }
  0xdf   :  { %v90_v15 = vadd.f32 %v199_v10, %v89_v14  ;;  %v224_v16 = vpop.f32.mrb[3].mxu0  ;;  %v93_v17 = vmax.f32 %v87_v12, 0.0 }
  0xe1   :  { %v94_v18 = vmax.f32 %v90_v15, 0.0 }
  0xe3   :  { %v95_v19 = vpack.c.bf16 %v94_v18, %v93_v17 }
  0xe5   :  { %234 = vmatmul.mubr.msk.bf16.vlgmr.msra.gmra.mrb[0].mxu1 %vm135_vm2, %v95_v19 }
 0x1b8   :  { %v173_v21 = vpop.f32.mrb[0].mxu1 }
 0x1b9   :  { %v174_v22 = vadd.f32 %v203_v20, %v173_v21  ;;  %v235_v23 = vpop.f32.mrb[1].mxu1 }
 0x1ba   :  { %v176_v24 = vpop.f32.mrb[2].mxu1 }
 0x1bb   :  { %181 = vst.msk [vmem:[#allocation2] sm:$0xff] %vm180_vm3, %v174_v22  ;;  %v177_v25 = vadd.f32 %v203_v20, %v176_v24  ;;  %v236_v26 = vpop.f32.mrb[3].mxu1 }
 0x1bd   :  { %182 = vst.msk [vmem:[#allocation2 + $0x8] sm:$0xff] %vm180_vm3, %v177_v25 }
 0x1be   :  { %187 = vsyncadd [#allocation3], 128  ;;  %s274_s2 = smov [#allocation2]  }
 0x1bf   :  { %s188_s3 = sshll.u32 %s274_s2, 4  ;;  %s189_s3 = int_to_ptr.vmem [resolvable:$true] %s188_s3 }
 0x1c0   :  { %s248_s11 = scalar_lea.vmem %s189_s3, 128  ;;  %s252_s12 = scalar_lea.vmem %s189_s3, 256 }
 0x1c1   :  { %p249_p0 = scmp.ne.s32.totalorder %s189_s3, %s248_s11  ;;  %p253_p1 = scmp.lt.s32.totalorder %s189_s3, %s189_s3 }
 0x1c2   :  { %p254_p2 = scmp.lt.s32.totalorder %s252_s12, %s248_s11 }
 0x1c4   :  { %p255_p3 = por %p254_p2, %p253_p1 }
 0x1c6   :  { %p256_p4 = pnand %p255_p3, %p249_p0 }
 0x1c8   :  { %259 = shalt.err (!%p256_p4)
}
 0x1c9   :  { %s260_s14 = scalar_lea.hbm %s354_s5, 128 }
 0x1ca   :  { %p261_p5 = scmp.ne.s32.totalorder %s354_s5, %s260_s14  ;;  %p264_p6 = scmp.lt.u32.totalorder %s260_s14, %s354_s5 }
 0x1cc   :  { %p266_p7 = pnand %p264_p6, %p261_p5 }
 0x1ce   :  { %269 = shalt.err (!%p266_p7)
}
 0x1cf   :  { %s275_s19 = smov 128   ;;  %s276_s20 = smov 8  }
 0x1d0   :  { %194 = dma.vmem_to_hbm [thread:$0]  %s189_s3, 128, %s354_s5, [#allocation3], %s275_s19, %s275_s19, %s276_s20  }
 0x1d1   :  { %270 = dma.done.wait [#allocation3], 256  }
 0x1d2   :  { %271 = vsyncadd [#allocation3], 4294967040 }
 0x1d3   :  { %198 = vsyncpa [#allocation3], 1 }

</bundles_post_ra>
